<compile_context>
chip_gen: v5e
topology: v5e:2x2
jax: 0.10.0
libtpu: 0.0.40
codegen_flags: <defaults>
</compile_context>

<pallas_src>
import functools

import jax
import jax.numpy as jnp
import numpy as np
from jax.experimental import pallas as pl
from jax.experimental.pallas import tpu as pltpu


def joint_polval_kernel(
    x_ref,
    w1_ref, b1_ref,
    w2_ref, b2_ref,
    w3_ref, b3_ref,
    wh_ref, bh_ref,     # fused [action_mean | value] head
    head_ref,           # (block_b, num_outputs + 1) output slab
    *, act_dtype,
):
    cdt = w1_ref.dtype                      # matmul operand dtype (f32 or bf16)

    def linear(inp, w_ref, b_ref):
        acc = jnp.dot(inp, w_ref[...], preferred_element_type=jnp.float32)
        return acc + b_ref[...].astype(jnp.float32)   # f32 MXU accumulation + f32 bias add

    # trunk: three linear layers; tanh runs in act_dtype
    # (bf16 on v6e/v7x with bf16 params -> halved EUP pushes and the h.astype(cdt)
    #  recasts below become no-ops; f32 otherwise, incl. v5e which has no bf16 EUP).
    h = jnp.tanh(linear(x_ref[...].astype(cdt), w1_ref, b1_ref).astype(act_dtype))
    h = jnp.tanh(linear(h.astype(cdt), w2_ref, b2_ref).astype(act_dtype))
    h = jnp.tanh(linear(h.astype(cdt), w3_ref, b3_ref).astype(act_dtype))

    # fused heads: one matmul, one lane-contiguous output slab [mean | value]
    head_ref[...] = linear(h.astype(cdt), wh_ref, bh_ref).astype(head_ref.dtype)


def _device_kind():
    try:
        return jax.devices()[0].device_kind.lower()
    except Exception:
        return ""


def _pick_block_b(B, num_inputs, hidden, n_head, x_itemsize,
                  vmem_limit_bytes, is_v7x):
    """Batch tile: multiple of 8 rows, sized against the real VMEM consumers."""
    # Per-row bytes: double-buffered x / head pipeline tiles plus ~3 f32
    # (block_b, hidden) trunk temporaries (the dominant term for this shape).
    per_row = (2 * num_inputs * x_itemsize
               + 2 * n_head * 4
               + 3 * hidden * 4)
    budget = int(0.75 * vmem_limit_bytes)          # headroom for weights / regalloc
    cap = 8192 if is_v7x else 32768                # v5e/v6e: amortize per-step overhead
    bb = min(budget // max(per_row, 1), cap, max(B, 8))
    if is_v7x:
        # >=4 grid steps so each of the 2 TensorCores gets >=2 tiles.
        bb = min(bb, max(8, pl.cdiv(B, 4)))
    bb = max(8, (int(bb) // 8) * 8)
    return bb


def prepare_params(params):
    """One-time packing of the two narrow heads into a single matmul operand.

    Hoisted out of the per-step forward so the concat does not re-execute on
    every call under jit.  Idempotent.
    """
    if "wh" in params:
        return params
    p = dict(params)
    p["wh"] = jnp.concatenate([params["wm"], params["wv"]], axis=1)   # (hidden, n_head)
    p["bh"] = jnp.concatenate([params["bm"], params["bv"]], axis=1)   # (1, n_head)
    return p


def joint_polval_forward(x, params, *, block_b=None):
    """Fused JointPolVal forward.  Returns (action_mean, action_log_std, action_std, value)."""
    params = prepare_params(params)        # no-op if already prepped
    B, num_inputs = x.shape
    hidden = params["w1"].shape[1]
    num_outputs = params["wm"].shape[1]
    n_head = num_outputs + 1
    compute_dtype = params["w1"].dtype

    kind = _device_kind()
    is_v5 = "v5" in kind
    is_v7 = "7" in kind
    vmem_limit = (32 << 20) if is_v7 else (64 << 20)

    # bf16 tanh only where the EUP supports it (v6e/v7x) and params are bf16.
    act_dtype = (jnp.bfloat16
                 if (compute_dtype == jnp.bfloat16 and not is_v5)
                 else jnp.float32)

    if block_b is None:
        block_b = _pick_block_b(B, num_inputs, hidden, n_head,
                                jnp.dtype(x.dtype).itemsize, vmem_limit, is_v7)
    block_b = max(8, (int(block_b) // 8) * 8)

    b_pad = pl.cdiv(B, block_b) * block_b
    if b_pad != B:                          # skip the extra HBM pass when divisible
        x = jnp.pad(x, ((0, b_pad - B), (0, 0)))
    # NOTE: x is deliberately NOT pre-cast here; the kernel casts to the weight
    # dtype.  Pass bf16 x from upstream to additionally halve the input DMA.

    grid = (b_pad // block_b,)
    const = lambda i: (0, 0)                # weights stay VMEM-resident across the grid

    flops = 2 * B * (num_inputs * hidden + 2 * hidden * hidden + hidden * n_head)
    weight_bytes = sum(
        int(np.prod(p.shape)) * jnp.dtype(p.dtype).itemsize
        for p in (params["w1"], params["b1"], params["w2"], params["b2"],
                  params["w3"], params["b3"], params["wh"], params["bh"])
    )
    bytes_accessed = (
        int(np.prod(x.shape)) * jnp.dtype(x.dtype).itemsize
        + b_pad * n_head * 4
        + weight_bytes
    )

    head = pl.pallas_call(
        functools.partial(joint_polval_kernel, act_dtype=act_dtype),
        out_shape=jax.ShapeDtypeStruct((b_pad, n_head), jnp.float32),
        grid=grid,
        in_specs=[
            pl.BlockSpec((block_b, num_inputs), lambda i: (i, 0)),
            pl.BlockSpec((num_inputs, hidden), const),
            pl.BlockSpec((1, hidden), const),
            pl.BlockSpec((hidden, hidden), const),
            pl.BlockSpec((1, hidden), const),
            pl.BlockSpec((hidden, hidden), const),
            pl.BlockSpec((1, hidden), const),
            pl.BlockSpec((hidden, n_head), const),
            pl.BlockSpec((1, n_head), const),
        ],
        out_specs=pl.BlockSpec((block_b, n_head), lambda i: (i, 0)),
        compiler_params=pltpu.CompilerParams(
            dimension_semantics=("parallel",),
            vmem_limit_bytes=vmem_limit,
        ),
        cost_estimate=pl.CostEstimate(
            flops=int(flops),
            transcendentals=int(3 * B * hidden),
            bytes_accessed=int(bytes_accessed),
        ),
    )(
        x,
        params["w1"], params["b1"],
        params["w2"], params["b2"],
        params["w3"], params["b3"],
        params["wh"], params["bh"],
    )

    head = head[:B]
    action_mean = head[:, :num_outputs]
    value = head[:, num_outputs:]

    # Input-independent broadcasts done once in the wrapper (not in the kernel).
    log_std_row = params["log_std"].astype(jnp.float32)
    action_log_std = jnp.broadcast_to(log_std_row, action_mean.shape)
    action_std = jnp.broadcast_to(jnp.exp(log_std_row), action_mean.shape)

    return action_mean, action_log_std, action_std, value


def init_params(key, num_inputs, num_outputs, hidden=64, dtype=jnp.float32):
    """Synthetic init mirroring the PyTorch module (weights stored transposed)."""
    keys = jax.random.split(key, 10)

    def lin(kw, kb, fan_in, fan_out):
        bound = 1.0 / np.sqrt(fan_in)
        w = jax.random.uniform(kw, (fan_in, fan_out), jnp.float32, -bound, bound)
        b = jax.random.uniform(kb, (1, fan_out), jnp.float32, -bound, bound)
        return w, b

    w1, b1 = lin(keys[0], keys[1], num_inputs, hidden)
    w2, b2 = lin(keys[2], keys[3], hidden, hidden)
    w3, b3 = lin(keys[4], keys[5], hidden, hidden)
    wm, bm = lin(keys[6], keys[7], hidden, num_outputs)
    wm = wm * 0.1
    bm = bm * 0.0
    wv, bv = lin(keys[8], keys[9], hidden, 1)
    log_std = -1.0 * jnp.ones((1, num_outputs), jnp.float32)

    p = dict(w1=w1, b1=b1, w2=w2, b2=b2, w3=w3, b3=b3,
             wm=wm, bm=bm, wv=wv, bv=bv)
    p = {k: v.astype(dtype) for k, v in p.items()}
    p["log_std"] = log_std           # kept f32; only used in the wrapper
    return p


def reference_forward(x, p):
    f32 = jnp.float32
    h = jnp.tanh(x.astype(f32) @ p["w1"].astype(f32) + p["b1"].astype(f32))
    h = jnp.tanh(h @ p["w2"].astype(f32) + p["b2"].astype(f32))
    h = jnp.tanh(h @ p["w3"].astype(f32) + p["b3"].astype(f32))
    mean = h @ p["wm"].astype(f32) + p["bm"].astype(f32)
    ls = jnp.broadcast_to(p["log_std"].astype(f32), mean.shape)
    return mean, ls, jnp.exp(ls), h @ p["wv"].astype(f32) + p["bv"].astype(f32)


if __name__ == "__main__":
    B, num_inputs, num_outputs, hidden = 20, 8, 4, 32

    key = jax.random.PRNGKey(0)
    kx, kp = jax.random.split(key)
    x = jax.random.normal(kx, (B, num_inputs), jnp.float32)

    # --- f32 correctness check (block_b=8 exercises multi-step grid + padding) ---
    params = prepare_params(init_params(kp, num_inputs, num_outputs, hidden,
                                        dtype=jnp.float32))
    outs = jax.block_until_ready(joint_polval_forward(x, params, block_b=8))
    refs = reference_forward(x, params)
    for o, r in zip(outs, refs):
        np.testing.assert_allclose(np.asarray(o), np.asarray(r), rtol=1e-5, atol=1e-5)

    # --- default (auto block_b) path ---
    outs_auto = jax.block_until_ready(joint_polval_forward(x, params))
    for o, r in zip(outs_auto, refs):
        np.testing.assert_allclose(np.asarray(o), np.asarray(r), rtol=1e-5, atol=1e-5)

    # --- bf16 matmul-operand path (bf16 tanh on v6e/v7x, f32 tanh on v5e) ---
    params_bf16 = prepare_params(init_params(kp, num_inputs, num_outputs, hidden,
                                             dtype=jnp.bfloat16))
    outs_bf16 = jax.block_until_ready(joint_polval_forward(x, params_bf16, block_b=8))
    for o, r in zip(outs_bf16, refs):
        np.testing.assert_allclose(np.asarray(o), np.asarray(r), rtol=1e-1, atol=1e-1)

    print("KERNEL_OK")
</pallas_src>

<mosaic_0001>
module attributes {stable_mosaic.version = 11 : i64} {
  func.func @joint_polval_kernel(%arg0: i32, %arg1: memref<8x8xf32, #tpu.memory_space<vmem>>, %arg2: memref<8x32xf32, #tpu.memory_space<vmem>>, %arg3: memref<1x32xf32, #tpu.memory_space<vmem>>, %arg4: memref<32x32xf32, #tpu.memory_space<vmem>>, %arg5: memref<1x32xf32, #tpu.memory_space<vmem>>, %arg6: memref<32x32xf32, #tpu.memory_space<vmem>>, %arg7: memref<1x32xf32, #tpu.memory_space<vmem>>, %arg8: memref<32x5xf32, #tpu.memory_space<vmem>>, %arg9: memref<1x5xf32, #tpu.memory_space<vmem>>, %arg10: memref<8x5xf32, #tpu.memory_space<vmem>>) attributes {dimension_semantics = [#tpu.dimension_semantics<parallel>], iteration_bounds = array<i64: 3>, scalar_prefetch = 0 : i64, scratch_operands = 0 : i64, tpu.core_type = #tpu.core_type<tc>, window_params = [{transform_indices = @transform_0, window_bounds = array<i64: 8, 8>}, {pipeline_mode = #tpu.pipeline_mode<synchronous>, transform_indices = @transform_1, window_bounds = array<i64: 8, 32>}, {pipeline_mode = #tpu.pipeline_mode<synchronous>, transform_indices = @transform_2, window_bounds = array<i64: 1, 32>}, {pipeline_mode = #tpu.pipeline_mode<synchronous>, transform_indices = @transform_3, window_bounds = array<i64: 32, 32>}, {pipeline_mode = #tpu.pipeline_mode<synchronous>, transform_indices = @transform_4, window_bounds = array<i64: 1, 32>}, {pipeline_mode = #tpu.pipeline_mode<synchronous>, transform_indices = @transform_5, window_bounds = array<i64: 32, 32>}, {pipeline_mode = #tpu.pipeline_mode<synchronous>, transform_indices = @transform_6, window_bounds = array<i64: 1, 32>}, {pipeline_mode = #tpu.pipeline_mode<synchronous>, transform_indices = @transform_7, window_bounds = array<i64: 32, 5>}, {pipeline_mode = #tpu.pipeline_mode<synchronous>, transform_indices = @transform_8, window_bounds = array<i64: 1, 5>}, {transform_indices = @transform_9, window_bounds = array<i64: 8, 5>}]} {
    %c0 = arith.constant 0 : index
    %c0_0 = arith.constant 0 : index
    %0 = vector.load %arg1[%c0, %c0_0] : memref<8x8xf32, #tpu.memory_space<vmem>>, vector<8x8xf32>
    %c0_1 = arith.constant 0 : index
    %c0_2 = arith.constant 0 : index
    %1 = vector.load %arg2[%c0_1, %c0_2] : memref<8x32xf32, #tpu.memory_space<vmem>>, vector<8x32xf32>
    %cst = arith.constant dense<0.000000e+00> : vector<8x32xf32>
    %2 = tpu.matmul %0, %1, %cst {dimension_numbers = #tpu.dot_dimension_numbers<[1], [0], [0], [1], [0, 0, 1, 1], [], []>} : vector<8x8xf32>, vector<8x32xf32>, vector<8x32xf32> -> vector<8x32xf32>
    %c0_3 = arith.constant 0 : index
    %c0_4 = arith.constant 0 : index
    %3 = vector.load %arg3[%c0_3, %c0_4] : memref<1x32xf32, #tpu.memory_space<vmem>>, vector<1x32xf32>
    %4 = vector.broadcast %3 : vector<1x32xf32> to vector<8x32xf32>
    %5 = arith.addf %2, %4 : vector<8x32xf32>
    %6 = math.tanh %5 : vector<8x32xf32>
    %c0_5 = arith.constant 0 : index
    %c0_6 = arith.constant 0 : index
    %7 = vector.load %arg4[%c0_5, %c0_6] : memref<32x32xf32, #tpu.memory_space<vmem>>, vector<32x32xf32>
    %cst_7 = arith.constant dense<0.000000e+00> : vector<8x32xf32>
    %8 = tpu.matmul %6, %7, %cst_7 {dimension_numbers = #tpu.dot_dimension_numbers<[1], [0], [0], [1], [0, 0, 1, 1], [], []>} : vector<8x32xf32>, vector<32x32xf32>, vector<8x32xf32> -> vector<8x32xf32>
    %c0_8 = arith.constant 0 : index
    %c0_9 = arith.constant 0 : index
    %9 = vector.load %arg5[%c0_8, %c0_9] : memref<1x32xf32, #tpu.memory_space<vmem>>, vector<1x32xf32>
    %10 = vector.broadcast %9 : vector<1x32xf32> to vector<8x32xf32>
    %11 = arith.addf %8, %10 : vector<8x32xf32>
    %12 = math.tanh %11 : vector<8x32xf32>
    %c0_10 = arith.constant 0 : index
    %c0_11 = arith.constant 0 : index
    %13 = vector.load %arg6[%c0_10, %c0_11] : memref<32x32xf32, #tpu.memory_space<vmem>>, vector<32x32xf32>
    %cst_12 = arith.constant dense<0.000000e+00> : vector<8x32xf32>
    %14 = tpu.matmul %12, %13, %cst_12 {dimension_numbers = #tpu.dot_dimension_numbers<[1], [0], [0], [1], [0, 0, 1, 1], [], []>} : vector<8x32xf32>, vector<32x32xf32>, vector<8x32xf32> -> vector<8x32xf32>
    %c0_13 = arith.constant 0 : index
    %c0_14 = arith.constant 0 : index
    %15 = vector.load %arg7[%c0_13, %c0_14] : memref<1x32xf32, #tpu.memory_space<vmem>>, vector<1x32xf32>
    %16 = vector.broadcast %15 : vector<1x32xf32> to vector<8x32xf32>
    %17 = arith.addf %14, %16 : vector<8x32xf32>
    %18 = math.tanh %17 : vector<8x32xf32>
    %c0_15 = arith.constant 0 : index
    %c0_16 = arith.constant 0 : index
    %19 = vector.load %arg8[%c0_15, %c0_16] : memref<32x5xf32, #tpu.memory_space<vmem>>, vector<32x5xf32>
    %cst_17 = arith.constant dense<0.000000e+00> : vector<8x5xf32>
    %20 = tpu.matmul %18, %19, %cst_17 {dimension_numbers = #tpu.dot_dimension_numbers<[1], [0], [0], [1], [0, 0, 1, 1], [], []>} : vector<8x32xf32>, vector<32x5xf32>, vector<8x5xf32> -> vector<8x5xf32>
    %c0_18 = arith.constant 0 : index
    %c0_19 = arith.constant 0 : index
    %21 = vector.load %arg9[%c0_18, %c0_19] : memref<1x5xf32, #tpu.memory_space<vmem>>, vector<1x5xf32>
    %22 = vector.broadcast %21 : vector<1x5xf32> to vector<8x5xf32>
    %23 = arith.addf %20, %22 : vector<8x5xf32>
    %c0_20 = arith.constant 0 : index
    %c0_21 = arith.constant 0 : index
    %24 = vector.load %arg10[%c0_20, %c0_21] : memref<8x5xf32, #tpu.memory_space<vmem>>, vector<8x5xf32>
    tpu.vector_store %arg10[%c0_20, %c0_21], %23 {strides = array<i32>} : memref<8x5xf32, #tpu.memory_space<vmem>>, vector<8x5xf32>,
    return
  }
  func.func @transform_0(%arg0: i32) -> (i32, i32) {
    %c0_i32 = arith.constant 0 : i32
    %c0_i32_0 = arith.constant 0 : i32
    return %arg0, %c0_i32 : i32, i32
  }
  func.func @transform_1(%arg0: i32) -> (i32, i32) {
    %c0_i32 = arith.constant 0 : i32
    %c0_i32_0 = arith.constant 0 : i32
    %c0_i32_1 = arith.constant 0 : i32
    return %c0_i32, %c0_i32_0 : i32, i32
  }
  func.func @transform_2(%arg0: i32) -> (i32, i32) {
    %c0_i32 = arith.constant 0 : i32
    %c0_i32_0 = arith.constant 0 : i32
    %c0_i32_1 = arith.constant 0 : i32
    return %c0_i32, %c0_i32_0 : i32, i32
  }
  func.func @transform_3(%arg0: i32) -> (i32, i32) {
    %c0_i32 = arith.constant 0 : i32
    %c0_i32_0 = arith.constant 0 : i32
    %c0_i32_1 = arith.constant 0 : i32
    return %c0_i32, %c0_i32_0 : i32, i32
  }
  func.func @transform_4(%arg0: i32) -> (i32, i32) {
    %c0_i32 = arith.constant 0 : i32
    %c0_i32_0 = arith.constant 0 : i32
    %c0_i32_1 = arith.constant 0 : i32
    return %c0_i32, %c0_i32_0 : i32, i32
  }
  func.func @transform_5(%arg0: i32) -> (i32, i32) {
    %c0_i32 = arith.constant 0 : i32
    %c0_i32_0 = arith.constant 0 : i32
    %c0_i32_1 = arith.constant 0 : i32
    return %c0_i32, %c0_i32_0 : i32, i32
  }
  func.func @transform_6(%arg0: i32) -> (i32, i32) {
    %c0_i32 = arith.constant 0 : i32
    %c0_i32_0 = arith.constant 0 : i32
    %c0_i32_1 = arith.constant 0 : i32
    return %c0_i32, %c0_i32_0 : i32, i32
  }
  func.func @transform_7(%arg0: i32) -> (i32, i32) {
    %c0_i32 = arith.constant 0 : i32
    %c0_i32_0 = arith.constant 0 : i32
    %c0_i32_1 = arith.constant 0 : i32
    return %c0_i32, %c0_i32_0 : i32, i32
  }
  func.func @transform_8(%arg0: i32) -> (i32, i32) {
    %c0_i32 = arith.constant 0 : i32
    %c0_i32_0 = arith.constant 0 : i32
    %c0_i32_1 = arith.constant 0 : i32
    return %c0_i32, %c0_i32_0 : i32, i32
  }
  func.func @transform_9(%arg0: i32) -> (i32, i32) {
    %c0_i32 = arith.constant 0 : i32
    %c0_i32_0 = arith.constant 0 : i32
    return %arg0, %c0_i32 : i32, i32
  }
}

</mosaic_0001>

<bundles_post_ra>
// kernel: tpu_custom_call.1
= control target key start
LH: loop header
LB: loop body
LE: loop exit
PB: predicated region body
PF: predicated region fallthrough
CT: control target
= control target key end

     0   :  { %14 = vsyncpa [#allocation3], 0  ;;  %s674_s30 = smov 0   ;;  %s752_s0 = inlined_call_operand.vmem [shape: f32[24,8], index: 0, kind: input, shape index: {}]   ;;  %s753_s1 = inlined_call_operand.hbm [shape: f32[8,32], index: 1, kind: input, shape index: {}]   ;;  %s754_s2 = inlined_call_operand.vmem [shape: f32[1,32], index: 2, kind: input, shape index: {}]   ;;  %s755_s3 = inlined_call_operand.vmem [shape: f32[32,32], index: 3, kind: input, shape index: {}]   ;;  %s756_s4 = inlined_call_operand.vmem [shape: f32[1,32], index: 4, kind: input, shape index: {}]   ;;  %s757_s5 = inlined_call_operand.vmem [shape: f32[32,32], index: 5, kind: input, shape index: {}]   ;;  %s758_s6 = inlined_call_operand.vmem [shape: f32[1,32], index: 6, kind: input, shape index: {}]   ;;  %s759_s7 = inlined_call_operand.vmem [shape: f32[32,5], index: 7, kind: input, shape index: {}]   ;;  %s760_s8 = inlined_call_operand.vmem [shape: f32[1,5], index: 8, kind: input, shape index: {}]   ;;  %s761_s9 = inlined_call_operand.vmem [shape: f32[24,5], index: 9, kind: output, shape index: {}]  }
   0x1 LB: > { %s537_s10 = sadd.s32 4294967295, %s621_s30   ;;  %p539_p0 = scmp.ge.s32.totalorder %s621_s30, 1  ;;  %s621_s30 = sphi %s674_s30, %s20_s30  }
   0x2   : > { %p245_p1 = scmp.lt.s32.totalorder %s621_s30, 4  ;;  %s257_s13 = sshll.u32 %s753_s1, 4  ;;  %s258_s13 = int_to_ptr.hbm [resolvable:$true] %s257_s13 }
   0x3   : > { %p560_p3 = scmp.eq.s32.totalorder %s537_s10, 0  ;;  %s623_s14 = smov [#allocation2]  }
   0x4   : > { %p246_p2 = pnand %p539_p0, %p245_p1  ;;  %s259_s15 = sshll.u32 %s623_s14, 4  ;;  %s260_s15 = int_to_ptr.vmem [resolvable:$true] %s259_s15 }
   0x6   : > { %p556_p4 = pneg %p246_p2  ;;  %300 = sbr.rel (%p246_p2) target bundleno = 564 (0x234), region = 56 }
   0x8   : > { %p557_p5 = pnand %p560_p3, %p556_p4 }
   0xa   : > { %559 = dma.hbm_to_vmem [thread:$0]  (!%p557_p5), %s258_s13, 128, %s260_s15, [#allocation3]  }
   0xb   : > { %616 = dma.done.wait (%p560_p3), [#allocation3], 128  }
   0xc   : > { %618 = vsyncadd (%p560_p3), [#allocation3], 4294967168  ;;  %p335_p6 = scmp.lt.s32.totalorder %s537_s10, 2  ;;  %vm349_vm0 = vcmask 64512   ;;  %v344_v0 = vld [vmem:[#allocation2] sm:$0xff]  ;;  %v377_v2 = vld [vmem:[%s755_s3 + $0x18] sm:$0xff] }
   0xd   : > { %368 = vmatpush.msra.mxu0 %v344_v0  ;;  %398 = vmatpush.msra.mxu1 %v377_v2  ;;  %v376_v3 = vld [vmem:[%s755_s3 + $0x10] sm:$0xff]  ;;  %v375_v4 = vld [vmem:[%s755_s3 + $0x8] sm:$0xff]  ;;  %v374_v5 = vld [vmem:[%s755_s3] sm:$0xff]  ;;  %vm382_vm1 = vcmask 261120   ;;  %vm470_vm2 = vcmask 39936  }
   0xe   : > { %s763_s10 = smov (!%p335_p6, %s537_s10), 2  ;;  %v571_v6 = vld [vmem:[%s754_s2] ss:$0 sm:$0xff]  ;;  %v410_v10 = vld [vmem:[%s757_s5 + $0x18] sm:$0xff]  ;;  %v409_v11 = vld [vmem:[%s757_s5 + $0x10] sm:$0xff] }
   0xf   : > { %s544_s16 = sshll.u32 %s763_s10, 3  ;;  %399 = vmatpush.msra.mxu1 %v376_v3  ;;  %430 = vmatpush.msra.mxu2 %v410_v10  ;;  %v408_v12 = vld [vmem:[%s757_s5 + $0x8] sm:$0xff]  ;;  %v407_v13 = vld [vmem:[%s757_s5] sm:$0xff]  ;;  %v442_v18 = vld [vmem:[%s759_s7 + $0x18] sm:$0xff] }
  0x10   : > { %s338_s19 = scalar_lea.vmem %s752_s0, %s544_s16  ;;  %v572_v14 = vld [vmem:[%s756_s4] ss:$0 sm:$0xff]  ;;  %462 = vmatpush.msra.mxu3 %v442_v18  ;;  %v441_v19 = vld [vmem:[%s759_s7 + $0x10] sm:$0xff]  ;;  %v440_v20 = vld [vmem:[%s759_s7 + $0x8] sm:$0xff]  ;;  %s342_s18 = scalar_lea.vmem %s761_s9, %s544_s16 }
  0x11   : > { %v343_v1 = vld [vmem:[%s338_s19] sm:$0xff]  ;;  %400 = vmatpush.msra.mxu1 %v375_v4  ;;  %431 = vmatpush.msra.mxu2 %v409_v11 }
  0x12   : > { %546 = vmatmul.msk.f32.vlgmr.msra.gmra.mxu0 %vm349_vm0, %v343_v1  ;;  %463 = vmatpush.msra.mxu3 %v441_v19  ;;  %v439_v21 = vld [vmem:[%s759_s7] sm:$0xff] }
  0x13   : > { %401 = vmatpush.msra.mxu1 %v374_v5  ;;  %432 = vmatpush.msra.mxu2 %v408_v12  ;;  %v573_v22 = vld [vmem:[%s758_s6] ss:$0 sm:$0xff] }
  0x14   : > { %464 = vmatpush.msra.mxu3 %v440_v20  ;;  %v574_v26 = vld [vmem:[%s760_s8] ss:$0 sm:$0xff] }
  0x15   : > { %433 = vmatpush.msra.mxu2 %v407_v13 }
  0x16   : > { %465 = vmatpush.msra.mxu3 %v439_v21 }
  0x8f   : > { %v370_v7 = vpop.f32.mrf.mxu0 }
  0x90   : > { %v371_v8 = vadd.f32 %v571_v6, %v370_v7 }
  0x92   : > { %575 = vtanh.f32 %v371_v8 }
  0x98   : > { %v576_v9 = vpop.eup %575 }
  0x99   : > { %547 = vmatmul.msk.f32.vlgmr.msra.gmra.mxu1 %vm382_vm1, %v576_v9 }
 0x116   : > { %v403_v15 = vpop.f32.mrf.mxu1 }
 0x117   : > { %v404_v16 = vadd.f32 %v572_v14, %v403_v15 }
 0x119   : > { %577 = vtanh.f32 %v404_v16 }
 0x11f   : > { %v578_v17 = vpop.eup %577 }
 0x120   : > { %548 = vmatmul.msk.f32.vlgmr.msra.gmra.mxu2 %vm382_vm1, %v578_v17 }
 0x1a3   : > { %v435_v23 = vpop.f32.mrf.mxu2 }
 0x1a4   : > { %v436_v24 = vadd.f32 %v573_v22, %v435_v23 }
 0x1a6   : > { %579 = vtanh.f32 %v436_v24 }
 0x1ac   : > { %v580_v25 = vpop.eup %579 }
 0x1ad   : > { %549 = vmatmul.msk.f32.vlgmr.msra.gmra.mxu3 %vm382_vm1, %v580_v25 }
 0x230   : > { %v467_v27 = vpop.f32.mrf.mxu3 }
 0x231   : > { %v468_v28 = vadd.f32 %v574_v26, %v467_v27 }
 0x233   : > { %471 = vst.msk [vmem:[%s342_s18] sm:$0xff] %vm470_vm2, %v468_v28 }
 0x234 PF: > { %s20_s30 = sadd.s32 1, %s621_s30  }
 0x235   : > { %p17_p7 = scmp.ge.s32.totalorder %s20_s30, 5  }
 0x237   :  { %19 = sbr.rel (!%p17_p7) target bundleno = 1 (0x1), region = 91 }
 0x23c   :  { %491 = vsyncpa [#allocation3], 1 }
 0x23d   :  { %493 = vsyncpa [#allocation3 + $0x1], 1 }

</bundles_post_ra>
